<compile_context>
chip_gen: v7x
topology: tpu7x:2x2x1
jax: 0.10.0
libtpu: 0.0.40
codegen_flags: <defaults>
</compile_context>

<pallas_src>
from collections import Counter
from functools import partial

import jax
import jax.numpy as jnp
from jax.experimental import pallas as pl
from jax.experimental.pallas import tpu as pltpu


# ----------------------- fused Pallas stream block --------------------------

def make_fused_stream_block(w1, b1, w2, b2):
    """Build conv2d(3x3, pad=1) -> ReLU -> conv2d(1x1) -> (+ x) as ONE Pallas kernel.

    Returns a jitted `forward(x)` (NCHW float32).  Parameters are captured at
    construction time (like nn.Module) so their layout prep becomes compile-time
    constants.
    """
    CMID, CIN, KH, KW = (int(s) for s in w1.shape)
    COUT = int(w2.shape[0])
    assert (KH, KW) == (3, 3) and tuple(int(s) for s in w2.shape[1:]) == (CMID, 1, 1)
    assert COUT == CIN  # residual add requires matching channels

    @jax.jit
    def forward(x):
        B, C, H, W = (int(s) for s in x.shape)
        assert C == CIN

        HP, WP = H + 2, W + 2                        # spatially padded (pad=1)
        PFLAT = HP * WP                              # flat padded spatial (324)
        NOUT = pl.cdiv(PFLAT, 128) * 128             # lane-dense width (384)
        SHIFT = WP + 1                               # max |flat shift| of a 3x3 tap (19)
        HALO = 128                                   # left halo; center tap lane-aligned
        XW = pl.cdiv(HALO + NOUT + SHIFT, 128) * 128  # kernel input width (640)

        BCIN, BMID, BOUT = B * CIN, B * CMID, B * COUT

        # ---- layout at the module boundary (single small fused pad chain) ----
        # NCHW -> [B*CIN, XW]: batches stacked along sublanes, flat padded
        # spatial along lanes, zero halo on both sides so every 3x3 tap is a
        # static, in-bounds lane slice.
        # TODO(synk): at larger shapes fold this pad/unpad into the kernel via a
        # manual DMA + in-kernel scatter; at 16x16 it is one tiny XLA fusion.
        xp = jnp.pad(x, ((0, 0), (0, 0), (1, 1), (1, 1)))
        x_lay = jnp.pad(xp.reshape(BCIN, PFLAT),
                        ((0, 0), (HALO, XW - HALO - PFLAT)))

        # ---- block-diagonal (over batch) weights & tiled biases --------------
        # Folding batch into sublanes: h[b*CMID+m, n] only sees x[b*CIN+c, n+d].
        # These are functions of the closed-over params -> constant-folded.
        eye_b = jnp.eye(B, dtype=jnp.float32)
        w1_taps = jnp.transpose(w1, (2, 3, 0, 1)).reshape(KH * KW, CMID, CIN)
        w1_bd = jnp.einsum("tmc,ab->tambc", w1_taps, eye_b).reshape(
            KH * KW, BMID, BCIN)
        w2_bd = jnp.einsum("om,ab->aobm", w2.reshape(COUT, CMID), eye_b).reshape(
            BOUT, BMID)
        b1_col = jnp.tile(b1, (B,)).reshape(BMID, 1).astype(jnp.float32)
        b2_col = jnp.tile(b2, (B,)).reshape(BOUT, 1).astype(jnp.float32)

        def kernel(x_ref, w1_ref, b1_ref, w2_ref, b2_ref, o_ref):
            # x_ref : [B*CIN, XW]          halo'd flat padded spatial (all batches)
            # w1_ref: [9, B*CMID, B*CIN]   per-tap block-diagonal 3x3 weights
            # b1_ref: [B*CMID, 1]
            # w2_ref: [B*COUT, B*CMID]     block-diagonal 1x1 weights
            # b2_ref: [B*COUT, 1]
            # o_ref : [B*COUT, NOUT]       lane-dense, full-sublane output slab
            h = jnp.broadcast_to(b1_ref[...], (BMID, NOUT))   # bias-initialized acc
            # conv1 (3x3): 9 accumulated MXU matmuls on static lane-shifted slices
            # (in-kernel im2col with no sublane concatenate / retiling).
            for ky in range(KH):
                for kx in range(KW):
                    t = ky * KW + kx
                    s = HALO + (ky - 1) * WP + (kx - 1)        # static lane offset
                    h = h + jnp.dot(w1_ref[t], x_ref[:, s:s + NOUT],
                                    preferred_element_type=jnp.float32)
            h = jnp.maximum(h, 0.0)                            # ReLU (stays in vregs)
            # conv2 (1x1) + bias + residual (aligned center tap == original input).
            y = jnp.dot(w2_ref[...], h,
                        preferred_element_type=jnp.float32) + b2_ref[...]
            o_ref[...] = (y + x_ref[:, HALO:HALO + NOUT]).astype(o_ref.dtype)

        # VMEM footprint guard (everything is tens of KiB at 16x16).
        # TODO(synk): if H*W or B scale up, tile NOUT into 128-multiple chunks on
        # a grid axis (halo-adjusted slices) and set vmem_limit_bytes explicitly
        # (v7x has 64 MiB VMEM / 32 MiB scoped default).
        vmem_bytes = 4 * (BCIN * XW                      # input slab
                          + KH * KW * BMID * 128         # tap weights (lane-padded)
                          + (BMID + BOUT) * 128          # biases (lane-padded)
                          + (2 * BMID + 2 * BOUT) * NOUT)  # live h / y / out
        assert vmem_bytes < 16 * 1024 * 1024, vmem_bytes

        out_lay = pl.pallas_call(
            kernel,
            out_shape=jax.ShapeDtypeStruct((BOUT, NOUT), jnp.float32),
            in_specs=[pl.BlockSpec(memory_space=pltpu.MemorySpace.VMEM)] * 5,
            out_specs=pl.BlockSpec(memory_space=pltpu.MemorySpace.VMEM),
        )(x_lay, w1_bd, b1_col, w2_bd, b2_col)

        # ---- back to NCHW: keep only the valid interior spatial positions ----
        out = out_lay[:, :PFLAT].reshape(B, COUT, HP, WP)[:, :, 1:1 + H, 1:1 + W]
        return out

    return forward


# ----------------------- plain-JAX reference modules ------------------------
# Used only to verify the fused kernel against the layer-by-layer stream
# semantics of the original StreamModule wiring.

def conv2d_ref(x, weight, bias, padding):
    out = jax.lax.conv_general_dilated(
        x, weight, window_strides=(1, 1),
        padding=((padding, padding), (padding, padding)),
        dimension_numbers=("NCHW", "OIHW", "NCHW"),
        precision=jax.lax.Precision.HIGHEST)
    return out + bias[None, :, None, None]


def relu_ref(x):
    return jnp.maximum(x, 0.0)


def add_ref(a, b):
    return a + b


# --------------------------- StreamModule port ------------------------------

def _get_first_key(d):
    return next(iter(d.keys()))


def _get_first_item(d):
    return next(iter(d.items()))


class StreamModuleJax:
    """Faithful port of StreamModule's wiring/forward logic (control flow only)."""

    def __init__(self, name, layers):
        # layers: list of (former, callable_module)
        self.__name = name

        def get_drop_indexes(former_list):
            def count_former_list(fl):
                f_list = [[_get_first_key(f) for f in former] for former in fl]
                results = [Counter(f) for f in f_list]
                return sum(results, Counter())

            count_result = count_former_list(former_list)
            indexes_except_last = set(range(len(former_list)))
            used_indexes = set(count_result.keys())
            return indexes_except_last.difference(used_indexes)

        self.__former_list = [former for former, _ in layers]
        self.__drop_indexes = get_drop_indexes(self.__former_list)
        self.__modules = [module for _, module in layers]

    def __call__(self, x):
        def get_input(former, results):
            items = [_get_first_item(f) for f in former]
            return tuple(results[k] if v == "all" else results[k][v] for k, v in items)

        index_pairs = enumerate(zip(self.__former_list, self.__modules), start=1)
        index_pairs = filter(lambda p: p[0] not in self.__drop_indexes, index_pairs)
        results_dict = {0: x}
        for i, (former, module) in index_pairs:
            x = module(*get_input(former, results_dict))
            results_dict[i] = x
        return x

    def get_module_name(self):
        return self.__name


# --------------------------------- main -------------------------------------

if __name__ == "__main__":
    key = jax.random.PRNGKey(0)
    k_x, k_w1, k_b1, k_w2, k_b2 = jax.random.split(key, 5)

    B, Cin, H, W = 2, 4, 16, 16
    Cmid = 8

    x = jax.random.normal(k_x, (B, Cin, H, W), dtype=jnp.float32)

    # Deterministic parameter init (Kaiming-uniform-like scale).
    w1 = jax.random.normal(k_w1, (Cmid, Cin, 3, 3), dtype=jnp.float32) * (1.0 / (Cin * 9) ** 0.5)
    b1 = jax.random.normal(k_b1, (Cmid,), dtype=jnp.float32) * 0.01
    w2 = jax.random.normal(k_w2, (Cin, Cmid, 1, 1), dtype=jnp.float32) * (1.0 / Cmid ** 0.5)
    b2 = jax.random.normal(k_b2, (Cin,), dtype=jnp.float32) * 0.01

    # Pallas-backed stream: the whole conv->relu->conv->add pattern runs as a
    # single fused, un-gridded Pallas kernel, driven by the StreamModule wiring.
    pallas_layers = [
        ([{0: "all"}], make_fused_stream_block(w1, b1, w2, b2)),
    ]
    pallas_stream = StreamModuleJax("pallas_stream", pallas_layers)

    # Reference stream: the original 4-layer wiring (multi-input former,
    # results-dict threading) with plain-JAX modules — same forward semantics.
    ref_layers = [
        ([{0: "all"}], partial(conv2d_ref, weight=w1, bias=b1, padding=1)),
        ([{1: "all"}], relu_ref),
        ([{2: "all"}], partial(conv2d_ref, weight=w2, bias=b2, padding=0)),
        ([{3: "all"}, {0: "all"}], add_ref),
    ]
    ref_stream = StreamModuleJax("ref_stream", ref_layers)

    out = jax.block_until_ready(pallas_stream(x))
    ref = jax.block_until_ready(ref_stream(x))

    assert out.shape == (B, Cin, H, W), out.shape
    assert out.dtype == jnp.float32
    assert bool(jnp.all(jnp.isfinite(out)))
    assert bool(jnp.allclose(out, ref, rtol=1e-3, atol=1e-3)), float(jnp.max(jnp.abs(out - ref)))
    print("KERNEL_OK")
</pallas_src>

<mosaic_0001>
module attributes {stable_mosaic.version = 11 : i64} {
  func.func @kernel(%arg0: memref<8x640xf32, #tpu.memory_space<vmem>>, %arg1: memref<9x16x8xf32, #tpu.memory_space<vmem>>, %arg2: memref<16x1xf32, #tpu.memory_space<vmem>>, %arg3: memref<8x16xf32, #tpu.memory_space<vmem>>, %arg4: memref<8x1xf32, #tpu.memory_space<vmem>>, %arg5: memref<8x384xf32, #tpu.memory_space<vmem>>) attributes {dimension_semantics = [], scalar_prefetch = 0 : i64, scratch_operands = 0 : i64, tpu.core_type = #tpu.core_type<tc>} {
    %c0 = arith.constant 0 : index
    %c0_0 = arith.constant 0 : index
    %0 = vector.load %arg2[%c0, %c0_0] : memref<16x1xf32, #tpu.memory_space<vmem>>, vector<16x1xf32>
    %1 = vector.shape_cast %0 : vector<16x1xf32> to vector<16x1xf32>
    %2 = vector.broadcast %1 : vector<16x1xf32> to vector<16x384xf32>
    %c0_1 = arith.constant 0 : index
    %c0_2 = arith.constant 0 : index
    %c0_3 = arith.constant 0 : index
    %3 = vector.load %arg1[%c0_1, %c0_2, %c0_3] : memref<9x16x8xf32, #tpu.memory_space<vmem>>, vector<1x16x8xf32>
    %4 = vector.shape_cast %3 : vector<1x16x8xf32> to vector<16x8xf32>
    %c0_4 = arith.constant 0 : index
    %c109 = arith.constant 109 : index
    %5 = vector.load %arg0[%c0_4, %c109] : memref<8x640xf32, #tpu.memory_space<vmem>>, vector<8x384xf32>
    %cst = arith.constant dense<0.000000e+00> : vector<16x384xf32>
    %6 = tpu.matmul %4, %5, %cst {dimension_numbers = #tpu.dot_dimension_numbers<[1], [0], [0], [1], [0, 0, 1, 1], [], []>} : vector<16x8xf32>, vector<8x384xf32>, vector<16x384xf32> -> vector<16x384xf32>
    %7 = arith.addf %2, %6 : vector<16x384xf32>
    %c1 = arith.constant 1 : index
    %c0_5 = arith.constant 0 : index
    %c0_6 = arith.constant 0 : index
    %8 = vector.load %arg1[%c1, %c0_5, %c0_6] : memref<9x16x8xf32, #tpu.memory_space<vmem>>, vector<1x16x8xf32>
    %9 = vector.shape_cast %8 : vector<1x16x8xf32> to vector<16x8xf32>
    %c0_7 = arith.constant 0 : index
    %c110 = arith.constant 110 : index
    %10 = vector.load %arg0[%c0_7, %c110] : memref<8x640xf32, #tpu.memory_space<vmem>>, vector<8x384xf32>
    %cst_8 = arith.constant dense<0.000000e+00> : vector<16x384xf32>
    %11 = tpu.matmul %9, %10, %cst_8 {dimension_numbers = #tpu.dot_dimension_numbers<[1], [0], [0], [1], [0, 0, 1, 1], [], []>} : vector<16x8xf32>, vector<8x384xf32>, vector<16x384xf32> -> vector<16x384xf32>
    %12 = arith.addf %7, %11 : vector<16x384xf32>
    %c2 = arith.constant 2 : index
    %c0_9 = arith.constant 0 : index
    %c0_10 = arith.constant 0 : index
    %13 = vector.load %arg1[%c2, %c0_9, %c0_10] : memref<9x16x8xf32, #tpu.memory_space<vmem>>, vector<1x16x8xf32>
    %14 = vector.shape_cast %13 : vector<1x16x8xf32> to vector<16x8xf32>
    %c0_11 = arith.constant 0 : index
    %c111 = arith.constant 111 : index
    %15 = vector.load %arg0[%c0_11, %c111] : memref<8x640xf32, #tpu.memory_space<vmem>>, vector<8x384xf32>
    %cst_12 = arith.constant dense<0.000000e+00> : vector<16x384xf32>
    %16 = tpu.matmul %14, %15, %cst_12 {dimension_numbers = #tpu.dot_dimension_numbers<[1], [0], [0], [1], [0, 0, 1, 1], [], []>} : vector<16x8xf32>, vector<8x384xf32>, vector<16x384xf32> -> vector<16x384xf32>
    %17 = arith.addf %12, %16 : vector<16x384xf32>
    %c3 = arith.constant 3 : index
    %c0_13 = arith.constant 0 : index
    %c0_14 = arith.constant 0 : index
    %18 = vector.load %arg1[%c3, %c0_13, %c0_14] : memref<9x16x8xf32, #tpu.memory_space<vmem>>, vector<1x16x8xf32>
    %19 = vector.shape_cast %18 : vector<1x16x8xf32> to vector<16x8xf32>
    %c0_15 = arith.constant 0 : index
    %c127 = arith.constant 127 : index
    %20 = vector.load %arg0[%c0_15, %c127] : memref<8x640xf32, #tpu.memory_space<vmem>>, vector<8x384xf32>
    %cst_16 = arith.constant dense<0.000000e+00> : vector<16x384xf32>
    %21 = tpu.matmul %19, %20, %cst_16 {dimension_numbers = #tpu.dot_dimension_numbers<[1], [0], [0], [1], [0, 0, 1, 1], [], []>} : vector<16x8xf32>, vector<8x384xf32>, vector<16x384xf32> -> vector<16x384xf32>
    %22 = arith.addf %17, %21 : vector<16x384xf32>
    %c4 = arith.constant 4 : index
    %c0_17 = arith.constant 0 : index
    %c0_18 = arith.constant 0 : index
    %23 = vector.load %arg1[%c4, %c0_17, %c0_18] : memref<9x16x8xf32, #tpu.memory_space<vmem>>, vector<1x16x8xf32>
    %24 = vector.shape_cast %23 : vector<1x16x8xf32> to vector<16x8xf32>
    %c0_19 = arith.constant 0 : index
    %c128 = arith.constant 128 : index
    %25 = vector.load %arg0[%c0_19, %c128] : memref<8x640xf32, #tpu.memory_space<vmem>>, vector<8x384xf32>
    %cst_20 = arith.constant dense<0.000000e+00> : vector<16x384xf32>
    %26 = tpu.matmul %24, %25, %cst_20 {dimension_numbers = #tpu.dot_dimension_numbers<[1], [0], [0], [1], [0, 0, 1, 1], [], []>} : vector<16x8xf32>, vector<8x384xf32>, vector<16x384xf32> -> vector<16x384xf32>
    %27 = arith.addf %22, %26 : vector<16x384xf32>
    %c5 = arith.constant 5 : index
    %c0_21 = arith.constant 0 : index
    %c0_22 = arith.constant 0 : index
    %28 = vector.load %arg1[%c5, %c0_21, %c0_22] : memref<9x16x8xf32, #tpu.memory_space<vmem>>, vector<1x16x8xf32>
    %29 = vector.shape_cast %28 : vector<1x16x8xf32> to vector<16x8xf32>
    %c0_23 = arith.constant 0 : index
    %c129 = arith.constant 129 : index
    %30 = vector.load %arg0[%c0_23, %c129] : memref<8x640xf32, #tpu.memory_space<vmem>>, vector<8x384xf32>
    %cst_24 = arith.constant dense<0.000000e+00> : vector<16x384xf32>
    %31 = tpu.matmul %29, %30, %cst_24 {dimension_numbers = #tpu.dot_dimension_numbers<[1], [0], [0], [1], [0, 0, 1, 1], [], []>} : vector<16x8xf32>, vector<8x384xf32>, vector<16x384xf32> -> vector<16x384xf32>
    %32 = arith.addf %27, %31 : vector<16x384xf32>
    %c6 = arith.constant 6 : index
    %c0_25 = arith.constant 0 : index
    %c0_26 = arith.constant 0 : index
    %33 = vector.load %arg1[%c6, %c0_25, %c0_26] : memref<9x16x8xf32, #tpu.memory_space<vmem>>, vector<1x16x8xf32>
    %34 = vector.shape_cast %33 : vector<1x16x8xf32> to vector<16x8xf32>
    %c0_27 = arith.constant 0 : index
    %c145 = arith.constant 145 : index
    %35 = vector.load %arg0[%c0_27, %c145] : memref<8x640xf32, #tpu.memory_space<vmem>>, vector<8x384xf32>
    %cst_28 = arith.constant dense<0.000000e+00> : vector<16x384xf32>
    %36 = tpu.matmul %34, %35, %cst_28 {dimension_numbers = #tpu.dot_dimension_numbers<[1], [0], [0], [1], [0, 0, 1, 1], [], []>} : vector<16x8xf32>, vector<8x384xf32>, vector<16x384xf32> -> vector<16x384xf32>
    %37 = arith.addf %32, %36 : vector<16x384xf32>
    %c7 = arith.constant 7 : index
    %c0_29 = arith.constant 0 : index
    %c0_30 = arith.constant 0 : index
    %38 = vector.load %arg1[%c7, %c0_29, %c0_30] : memref<9x16x8xf32, #tpu.memory_space<vmem>>, vector<1x16x8xf32>
    %39 = vector.shape_cast %38 : vector<1x16x8xf32> to vector<16x8xf32>
    %c0_31 = arith.constant 0 : index
    %c146 = arith.constant 146 : index
    %40 = vector.load %arg0[%c0_31, %c146] : memref<8x640xf32, #tpu.memory_space<vmem>>, vector<8x384xf32>
    %cst_32 = arith.constant dense<0.000000e+00> : vector<16x384xf32>
    %41 = tpu.matmul %39, %40, %cst_32 {dimension_numbers = #tpu.dot_dimension_numbers<[1], [0], [0], [1], [0, 0, 1, 1], [], []>} : vector<16x8xf32>, vector<8x384xf32>, vector<16x384xf32> -> vector<16x384xf32>
    %42 = arith.addf %37, %41 : vector<16x384xf32>
    %c8 = arith.constant 8 : index
    %c0_33 = arith.constant 0 : index
    %c0_34 = arith.constant 0 : index
    %43 = vector.load %arg1[%c8, %c0_33, %c0_34] : memref<9x16x8xf32, #tpu.memory_space<vmem>>, vector<1x16x8xf32>
    %44 = vector.shape_cast %43 : vector<1x16x8xf32> to vector<16x8xf32>
    %c0_35 = arith.constant 0 : index
    %c147 = arith.constant 147 : index
    %45 = vector.load %arg0[%c0_35, %c147] : memref<8x640xf32, #tpu.memory_space<vmem>>, vector<8x384xf32>
    %cst_36 = arith.constant dense<0.000000e+00> : vector<16x384xf32>
    %46 = tpu.matmul %44, %45, %cst_36 {dimension_numbers = #tpu.dot_dimension_numbers<[1], [0], [0], [1], [0, 0, 1, 1], [], []>} : vector<16x8xf32>, vector<8x384xf32>, vector<16x384xf32> -> vector<16x384xf32>
    %47 = arith.addf %42, %46 : vector<16x384xf32>
    %cst_37 = arith.constant 0.000000e+00 : f32
    %48 = vector.broadcast %cst_37 : f32 to vector<16x384xf32>
    %49 = arith.maximumf %47, %48 : vector<16x384xf32>
    %c0_38 = arith.constant 0 : index
    %c0_39 = arith.constant 0 : index
    %50 = vector.load %arg3[%c0_38, %c0_39] : memref<8x16xf32, #tpu.memory_space<vmem>>, vector<8x16xf32>
    %cst_40 = arith.constant dense<0.000000e+00> : vector<8x384xf32>
    %51 = tpu.matmul %50, %49, %cst_40 {dimension_numbers = #tpu.dot_dimension_numbers<[1], [0], [0], [1], [0, 0, 1, 1], [], []>} : vector<8x16xf32>, vector<16x384xf32>, vector<8x384xf32> -> vector<8x384xf32>
    %c0_41 = arith.constant 0 : index
    %c0_42 = arith.constant 0 : index
    %52 = vector.load %arg4[%c0_41, %c0_42] : memref<8x1xf32, #tpu.memory_space<vmem>>, vector<8x1xf32>
    %53 = vector.broadcast %52 : vector<8x1xf32> to vector<8x384xf32>
    %54 = arith.addf %51, %53 : vector<8x384xf32>
    %c0_43 = arith.constant 0 : index
    %c128_44 = arith.constant 128 : index
    %55 = vector.load %arg0[%c0_43, %c128_44] : memref<8x640xf32, #tpu.memory_space<vmem>>, vector<8x384xf32>
    %56 = arith.addf %54, %55 : vector<8x384xf32>
    %c0_45 = arith.constant 0 : index
    %c0_46 = arith.constant 0 : index
    %57 = vector.load %arg5[%c0_45, %c0_46] : memref<8x384xf32, #tpu.memory_space<vmem>>, vector<8x384xf32>
    tpu.vector_store %arg5[%c0_45, %c0_46], %56 {strides = array<i32>} : memref<8x384xf32, #tpu.memory_space<vmem>>, vector<8x384xf32>,
    return
  }
}

</mosaic_0001>

<bundles_post_ra>
// kernel: tile.10
= control target key start
LH: loop header
LB: loop body
LE: loop exit
PB: predicated region body
PF: predicated region fallthrough
CT: control target
= control target key end

     0   :  { %s22_s0 = inlined_call_operand.vmem [shape: f32[8], index: 0, kind: input, shape index: {}]   ;;  %s23_s1 = inlined_call_operand.vmem [shape: f32[2,8], index: 1, kind: output, shape index: {}]  }
   0x1   :  { %v4_v0 = vld [vmem:[%s22_s0] ss:$0 sm:$0xff] }
   0x2   :  { %5 = vst [vmem:[%s23_s1] sm:$0x3] %v4_v0 }

// kernel: tile.0
= control target key start
LH: loop header
LB: loop body
LE: loop exit
PB: predicated region body
PF: predicated region fallthrough
CT: control target
= control target key end

     0   :  { %s66_s8 = smov 125   ;;  %vm7_vm0 = vcmask 7168   ;;  %s67_s11 = smov 126   ;;  %s117_s0 = inlined_call_operand.vmem [shape: f32[2,8], index: 0, kind: input, shape index: {}]   ;;  %s118_s1 = inlined_call_operand.vmem [shape: f32[16,1], index: 1, kind: output, shape index: {}]  }
   0x1   :  { %v4_v0 = vld [vmem:[%s117_s0] sm:$0x3]  ;;  %s65_s0 = smov 127   ;;  %s68_s12 = smov 124  }
   0x2   :  { %5 = vst [vmem:[#allocation0] sm:$0x3] %v4_v0  ;;  %s69_s13 = smov 123   ;;  %s70_s14 = smov 122  }
   0x3   :  { %s71_s15 = smov 121  }
   0x9   :  { %v9_v1 = vld [vmem:[#allocation0] sm:$0x3]  }
   0xa   :  { %v21_v2 = vld [vmem:[#allocation0] sm:$0x3]   ;;  %10 = vrot.lane.b32.xlu0 %v9_v1, %s65_s0 }
   0xb   :  { %22 = vrot.lane.b32.xlu1 %v21_v2, %s66_s8  ;;  %v15_v3 = vld [vmem:[#allocation0] sm:$0x3]  }
   0xc   :  { %v27_v4 = vld [vmem:[#allocation0] sm:$0x3]  }
   0xd   :  { %v6_v5 = vld [vmem:[#allocation0] sm:$0x3]  }
   0xe   :  { %8 = vst.msk [vmem:[%s118_s1] ss:$8 sm:$0x3] %vm7_vm0, %v6_v5   ;;  %16 = vrot.lane.b32.xlu0 %v15_v3, %s67_s11  ;;  %v33_v6 = vld [vmem:[#allocation0] sm:$0x3]  }
   0xf   :  { %28 = vrot.lane.b32.xlu1 %v27_v4, %s68_s12  ;;  %v39_v7 = vld [vmem:[#allocation0] sm:$0x3]  }
  0x10   :  { %v45_v8 = vld [vmem:[#allocation0] sm:$0x3]  }
  0x12   :  { %34 = vrot.lane.b32.xlu0 %v33_v6, %s69_s13 }
  0x13   :  { %40 = vrot.lane.b32.xlu1 %v39_v7, %s70_s14 }
  0x16   :  { %46 = vrot.lane.b32.xlu0 %v45_v8, %s71_s15 }
  0x7c   :  { %v11_v9 = vpop.permute.xlu0 %10  }
  0x7d   :  { %v23_v10 = vpop.permute.xlu1 %22   ;;  %51 = vst.msk [vmem:[%s118_s1 + $0x1] ss:$8 sm:$0x3] %vm7_vm0, %v11_v9  }
  0x7e   :  { %53 = vst.msk [vmem:[%s118_s1 + $0x3] ss:$8 sm:$0x3] %vm7_vm0, %v23_v10  }
  0x80   :  { %v17_v11 = vpop.permute.xlu0 %16  }
  0x81   :  { %v29_v12 = vpop.permute.xlu1 %28   ;;  %52 = vst.msk [vmem:[%s118_s1 + $0x2] ss:$8 sm:$0x3] %vm7_vm0, %v17_v11  }
  0x82   :  { %54 = vst.msk [vmem:[%s118_s1 + $0x4] ss:$8 sm:$0x3] %vm7_vm0, %v29_v12  }
  0x84   :  { %v35_v13 = vpop.permute.xlu0 %34  }
  0x85   :  { %v41_v14 = vpop.permute.xlu1 %40   ;;  %55 = vst.msk [vmem:[%s118_s1 + $0x5] ss:$8 sm:$0x3] %vm7_vm0, %v35_v13  }
  0x86   :  { %56 = vst.msk [vmem:[%s118_s1 + $0x6] ss:$8 sm:$0x3] %vm7_vm0, %v41_v14  }
  0x88   :  { %v47_v15 = vpop.permute.xlu0 %46  }
  0x89   :  { %57 = vst.msk [vmem:[%s118_s1 + $0x7] ss:$8 sm:$0x3] %vm7_vm0, %v47_v15  }

// kernel: tile.14
= control target key start
LH: loop header
LB: loop body
LE: loop exit
PB: predicated region body
PF: predicated region fallthrough
CT: control target
= control target key end

     0   :  { %s22_s0 = inlined_call_operand.vmem [shape: f32[4], index: 0, kind: input, shape index: {}]   ;;  %s23_s1 = inlined_call_operand.vmem [shape: f32[2,4], index: 1, kind: output, shape index: {}]  }
   0x1   :  { %v4_v0 = vld [vmem:[%s22_s0] ss:$0 sm:$0xff] }
   0x2   :  { %5 = vst [vmem:[%s23_s1] sm:$0x3] %v4_v0 }

// kernel: tile.1
= control target key start
LH: loop header
LB: loop body
LE: loop exit
PB: predicated region body
PF: predicated region fallthrough
CT: control target
= control target key end

     0   :  { %s34_s8 = smov 125   ;;  %vm7_vm0 = vcmask 7168   ;;  %s35_s11 = smov 126   ;;  %s61_s0 = inlined_call_operand.vmem [shape: f32[2,4], index: 0, kind: input, shape index: {}]   ;;  %s62_s1 = inlined_call_operand.vmem [shape: f32[8,1], index: 1, kind: output, shape index: {}]  }
   0x1   :  { %v4_v0 = vld [vmem:[%s61_s0] sm:$0x3]  ;;  %s33_s0 = smov 127  }
   0x2   :  { %5 = vst [vmem:[#allocation0] sm:$0x3] %v4_v0 }
   0x9   :  { %v9_v1 = vld [vmem:[#allocation0] sm:$0x3]  }
   0xa   :  { %v21_v2 = vld [vmem:[#allocation0] sm:$0x3]   ;;  %10 = vrot.lane.b32.xlu0 %v9_v1, %s33_s0 }
   0xb   :  { %22 = vrot.lane.b32.xlu1 %v21_v2, %s34_s8  ;;  %v6_v3 = vld [vmem:[#allocation0] sm:$0x3]  }
   0xc   :  { %v15_v4 = vld [vmem:[#allocation0] sm:$0x3]   ;;  %8 = vst.msk [vmem:[%s62_s1] ss:$4 sm:$0x3] %vm7_vm0, %v6_v3  }
   0xe   :  { %16 = vrot.lane.b32.xlu0 %v15_v4, %s35_s11 }
  0x7c   :  { %v11_v5 = vpop.permute.xlu0 %10  }
  0x7d   :  { %v23_v6 = vpop.permute.xlu1 %22   ;;  %27 = vst.msk [vmem:[%s62_s1 + $0x1] ss:$4 sm:$0x3] %vm7_vm0, %v11_v5  }
  0x7e   :  { %29 = vst.msk [vmem:[%s62_s1 + $0x3] ss:$4 sm:$0x3] %vm7_vm0, %v23_v6  }
  0x80   :  { %v17_v7 = vpop.permute.xlu0 %16  }
  0x81   :  { %28 = vst.msk [vmem:[%s62_s1 + $0x2] ss:$4 sm:$0x3] %vm7_vm0, %v17_v7  }

// kernel: forward.1
= control target key start
LH: loop header
LB: loop body
LE: loop exit
PB: predicated region body
PF: predicated region fallthrough
CT: control target
= control target key end

     0   :  { %v2050_v2 = vmov 0.0   ;;  %s2051_s22 = smov 19   ;;  %s2052_s27 = smov 18   ;;  %v2059_v6 = vmov 0   ;;  %vm50_vm0 = vcmask 154624   ;;  %vm57_vm1 = vcmask 64512   ;;  %s2296_s0 = inlined_call_operand.vmem [shape: f32[8,640], index: 0, kind: input, shape index: {}]   ;;  %s2297_s2 = inlined_call_operand.vmem [shape: f32[16,1], index: 2, kind: input, shape index: {}]   ;;  %s2298_s4 = inlined_call_operand.vmem [shape: f32[8,1], index: 4, kind: input, shape index: {}]   ;;  %s2299_s1 = inlined_call_operand.vmem [shape: f32[9,16,8], index: 1, kind: input, shape index: {}]   ;;  %s2300_s3 = inlined_call_operand.vmem [shape: f32[8,16], index: 3, kind: input, shape index: {}]   ;;  %s2301_s5 = inlined_call_operand.vmem [shape: f32[8,384], index: 5, kind: output, shape index: {}]  }
   0x1   :  { %v2095_v0 = vld [vmem:[%s2296_s0 + $0x8] sm:$0xff]  ;;  %v34_v1 = vld [vmem:[%s2296_s0] sm:$0xff]  ;;  %128 = vmatprep.mubr.f32.mxu1 %v2050_v2  ;;  %492 = vmatprep.mubr.f32.mxu0 %v2050_v2  ;;  %v2106_v3 = vld [vmem:[%s2296_s0 + $0x10] sm:$0xff]  ;;  %s2053_s28 = smov 17   ;;  %s2054_s29 = smov 1   ;;  %vm233_vm2 = vcmask 146432  }
   0x2   :  { %44 = vrot.lane.b32.xlu0 %v2095_v0, %s2051_s22  ;;  %42 = vrot.lane.b32.xlu1 %v34_v1, %s2051_s22  ;;  %v2111_v4 = vld [vmem:[%s2296_s0 + $0x18] sm:$0xff]  ;;  %s2055_s30 = smov 127   ;;  %s2056_s6 = smov 111   ;;  %v941_v5 = vld [vmem:[%s2296_s0 + $0x20] sm:$0xff]  ;;  %vm415_vm3 = vcmask 138240   ;;  %vm597_vm4 = vcmask 7168  }
   0x3   :  { %s2057_s9 = smov 110   ;;  %s2058_s10 = smov 109   ;;  %2048 = vset.pattern.permute.xlu0 %v2059_v6  ;;  %v20_v7 = vld [vmem:[%s2297_s2] sm:$0xff]  ;;  %2049 = vset.pattern.permute.xlu1 %v2059_v6  ;;  %v21_v8 = vld [vmem:[%s2297_s2 + $0x8] sm:$0xff]  ;;  %v1843_v29 = vld [vmem:[%s2299_s1 + $0x10] sm:$0xff]  ;;  %vm954_vm5 = vcmask 1039360  }
   0x4   :  { %v1678_v9 = vld [vmem:[%s2298_s4] sm:$0xff]  ;;  %v33_v21 = vld [vmem:[%s2299_s1 + $0x8] sm:$0xff]  ;;  %v1844_v34 = vld [vmem:[%s2299_s1 + $0x18] sm:$0xff]  ;;  %vm1136_vm6 = vcmask 908288   ;;  %vm1318_vm7 = vcmask 900096   ;;  %vm1500_vm8 = vcmask 891904  }
   0x5   :  { %v32_v15 = vld [vmem:[%s2299_s1] sm:$0xff]  ;;  %v1850_v37 = vld [vmem:[%s2299_s1 + $0x28] sm:$0xff]  ;;  %v1855_v42 = vld [vmem:[%s2299_s1 + $0x30] sm:$0xff]  ;;  %vm1684_vm9 = vcmask 130048   ;;  %vm2061_vm10 = vmmov 0  }
   0x6   :  { %46 = vrot.lane.b32.xlu0 %v2106_v3, %s2051_s22  ;;  %48 = vrot.lane.b32.xlu1 %v2111_v4, %s2051_s22  ;;  %v1849_v32 = vld [vmem:[%s2299_s1 + $0x20] sm:$0xff]  ;;  %v1856_v46 = vld [vmem:[%s2299_s1 + $0x38] sm:$0xff] }
   0x7   :  { %v1861_v50 = vld [vmem:[%s2299_s1 + $0x40] sm:$0xff]  ;;  %v1862_v54 = vld [vmem:[%s2299_s1 + $0x48] sm:$0xff]  ;;  %v1867_v59 = vld [vmem:[%s2299_s1 + $0x50] sm:$0xff] }
   0x8   :  { %v1868_v63 = vld [vmem:[%s2299_s1 + $0x58] sm:$0xff] }
   0xa   :  { %227 = vrot.lane.b32.xlu0 %v2095_v0, %s2052_s27  ;;  %229 = vrot.lane.b32.xlu1 %v2106_v3, %s2052_s27 }
   0xe   :  { %225 = vrot.lane.b32.xlu0 %v34_v1, %s2052_s27  ;;  %409 = vrot.lane.b32.xlu1 %v2095_v0, %s2053_s28 }
  0x12   :  { %411 = vrot.lane.b32.xlu0 %v2106_v3, %s2053_s28  ;;  %231 = vrot.lane.b32.xlu1 %v2111_v4, %s2052_s27 }
  0x16   :  { %407 = vrot.lane.b32.xlu0 %v34_v1, %s2053_s28  ;;  %591 = vrot.lane.b32.xlu1 %v2095_v0, %s2054_s29 }
  0x1a   :  { %593 = vrot.lane.b32.xlu0 %v2106_v3, %s2054_s29  ;;  %413 = vrot.lane.b32.xlu1 %v2111_v4, %s2053_s28 }
  0x1e   :  { %589 = vrot.lane.b32.xlu0 %v34_v1, %s2054_s29  ;;  %595 = vrot.lane.b32.xlu1 %v2111_v4, %s2054_s29 }
  0x22   :  { %950 = vrot.lane.b32.xlu1 %v2111_v4, %s2055_s30  ;;  %948 = vrot.lane.b32.xlu0 %v2106_v3, %s2055_s30 }
  0x26   :  { %1130 = vrot.lane.b32.xlu1 %v2106_v3, %s2056_s6  ;;  %946 = vrot.lane.b32.xlu0 %v2095_v0, %s2055_s30 }
  0x2a   :  { %952 = vrot.lane.b32.xlu1 %v941_v5, %s2055_s30  ;;  %1132 = vrot.lane.b32.xlu0 %v2111_v4, %s2056_s6 }
  0x2e   :  { %1312 = vrot.lane.b32.xlu1 %v2106_v3, %s2057_s9  ;;  %1128 = vrot.lane.b32.xlu0 %v2095_v0, %s2056_s6 }
  0x32   :  { %1134 = vrot.lane.b32.xlu1 %v941_v5, %s2056_s6  ;;  %1314 = vrot.lane.b32.xlu0 %v2111_v4, %s2057_s9 }
  0x36   :  { %1494 = vrot.lane.b32.xlu1 %v2106_v3, %s2058_s10  ;;  %1310 = vrot.lane.b32.xlu0 %v2095_v0, %s2057_s9 }
  0x3a   :  { %1316 = vrot.lane.b32.xlu1 %v941_v5, %s2057_s9  ;;  %1496 = vrot.lane.b32.xlu0 %v2111_v4, %s2058_s10 }
  0x3e   :  { %1492 = vrot.lane.b32.xlu0 %v2095_v0, %s2058_s10  ;;  %1498 = vrot.lane.b32.xlu1 %v941_v5, %s2058_s10 }
  0x42   :  { %24 = vperm.xlu0 %2048, %v20_v7   ;;  %29 = vperm.xlu1 %2049, %v21_v8   ;;  %v1873_v8 = vld [vmem:[%s2299_s1 + $0x60] sm:$0xff] }
  0x46   :  { %1681 = vperm.xlu1 %2049, %v1678_v9  }
  0x74   :  { %v45_v10 = vpop.permute.xlu0 %44  ;;  %v43_v11 = vpop.permute.xlu1 %42 }
  0x75   :  { %v51_v16 = vsel %vm50_vm0, %v43_v11, %v45_v10 }
  0x78   :  { %v47_v12 = vpop.permute.xlu0 %46  ;;  %v49_v13 = vpop.permute.xlu1 %48 }
  0x79   :  { %v52_v14 = vsel %vm50_vm0, %v45_v10, %v47_v12  ;;  %v53_v17 = vsel %vm50_vm0, %v47_v12, %v49_v13  ;;  %v1874_v12 = vld [vmem:[%s2299_s1 + $0x68] sm:$0xff] }
  0x7a   :  { %64 = vmatprep.subr.mxu1 %v52_v14 }
  0x7b   :  { %65 = vmatpush1.msra.mxu1 %v51_v16  ;;  %v1879_v16 = vld [vmem:[%s2299_s1 + $0x70] sm:$0xff] }
  0x7c   :  { %v228_v18 = vpop.permute.xlu0 %227  ;;  %1839 = vmatmul.mubr.msk.f32.vlgmr.msra.gmra.mrb[0].mxu1 %vm57_vm1, %v32_v15  ;;  %1923 = vmatprep.subr.mxu1 %v53_v17  ;;  %v230_v19 = vpop.permute.xlu1 %229 }
  0x7d   :  { %1924 = vmatpush3.msra.mxu1 %v53_v17  ;;  %v235_v20 = vsel %vm233_vm2, %v228_v18, %v230_v19  ;;  %134 = vmatprep.mubr.f32.mxu1 %v2050_v2 }
  0x7e   :  { %246 = vmatprep.subr.mxu1 %v235_v20  ;;  %v1880_v20 = vld [vmem:[%s2299_s1 + $0x78] sm:$0xff] }
  0x80   :  { %v226_v22 = vpop.permute.xlu0 %225  ;;  %1840 = vmatmul.mubr.msk.f32.gmra.mrb[2].mxu1 %vm57_vm1, %v33_v21  ;;  %v410_v23 = vpop.permute.xlu1 %409 }
  0x81   :  { %1925 = vmatprep.mubr.msk.f32.mxu1 %vm57_vm1, %v32_v15  ;;  %v234_v24 = vsel %vm233_vm2, %v226_v22, %v228_v18  ;;  %v1885_v22 = vld [vmem:[%s2299_s1 + $0x80] sm:$0xff] }
  0x84   :  { %v412_v25 = vpop.permute.xlu0 %411  ;;  %1926 = vmatmul.mubr.msk.f32.vlgmr.msra.gmra.mrb[4].mxu1 %vm57_vm1, %v33_v21  ;;  %v232_v26 = vpop.permute.xlu1 %231 }
  0x85   :  { %247 = vmatpush1.msra.mxu1 %v234_v24  ;;  %v236_v27 = vsel %vm233_vm2, %v230_v19, %v232_v26  ;;  %v417_v28 = vsel %vm415_vm3, %v410_v23, %v412_v25  ;;  %310 = vmatprep.mubr.f32.mxu1 %v2050_v2 }
  0x86   :  { %1928 = vmatprep.subr.mxu1 %v236_v27  ;;  %428 = vmatprep.subr.mxu0 %v417_v28 }
  0x88   :  { %v408_v30 = vpop.permute.xlu0 %407  ;;  %1845 = vmatmul.mubr.msk.f32.vlgmr.msra.gmra.mrb[0].mxu1 %vm57_vm1, %v1843_v29  ;;  %v592_v31 = vpop.permute.xlu1 %591 }
  0x89   :  { %1929 = vmatpush3.msra.mxu1 %v236_v27  ;;  %v416_v33 = vsel %vm415_vm3, %v408_v30, %v410_v23  ;;  %316 = vmatprep.mubr.f32.mxu1 %v2050_v2  ;;  %v1886_v23 = vld [vmem:[%s2299_s1 + $0x88] sm:$0xff] }
  0x8a   :  { %429 = vmatpush1.msra.mxu0 %v416_v33 }
  0x8b   :  { %1851 = vmatmul.mubr.msk.f32.vlgmr.msra.gmra.mrb[0].mxu0 %vm57_vm1, %v1849_v32 }
  0x8c   :  { %v594_v35 = vpop.permute.xlu0 %593  ;;  %1846 = vmatmul.mubr.msk.f32.gmra.mrb[2].mxu1 %vm57_vm1, %v1844_v34  ;;  %v414_v36 = vpop.permute.xlu1 %413  ;;  %498 = vmatprep.mubr.f32.mxu0 %v2050_v2 }
  0x8d   :  { %v418_v38 = vsel %vm415_vm3, %v412_v25, %v414_v36  ;;  %v599_v39 = vsel %vm597_vm4, %v592_v31, %v594_v35  ;;  %1930 = vmatprep.mubr.msk.f32.mxu1 %vm57_vm1, %v1843_v29 }
  0x8e   :  { %1933 = vmatprep.subr.mxu1 %v418_v38  ;;  %610 = vmatprep.subr.mxu0 %v599_v39 }
  0x8f   :  { %1852 = vmatmul.mubr.msk.f32.gmra.mrb[2].mxu0 %vm57_vm1, %v1850_v37 }
  0x90   :  { %v590_v40 = vpop.permute.xlu0 %589  ;;  %1931 = vmatmul.mubr.msk.f32.vlgmr.msra.gmra.mrb[4].mxu1 %vm57_vm1, %v1844_v34  ;;  %v596_v41 = vpop.permute.xlu1 %595  ;;  %674 = vmatprep.mubr.f32.mxu0 %v2050_v2 }
  0x91   :  { %v598_v43 = vsel %vm597_vm4, %v590_v40, %v592_v31  ;;  %1934 = vmatpush3.msra.mxu1 %v418_v38  ;;  %v600_v44 = vsel %vm597_vm4, %v594_v35, %v596_v41  ;;  %1935 = vmatprep.mubr.msk.f32.mxu1 %vm57_vm1, %v1849_v32 }
  0x92   :  { %611 = vmatpush1.msra.mxu0 %v598_v43  ;;  %1938 = vmatprep.subr.mxu1 %v600_v44 }
  0x93   :  { %1857 = vmatmul.mubr.msk.f32.vlgmr.msra.gmra.mrb[0].mxu0 %vm57_vm1, %v1855_v42  ;;  %777 = vmatprep.subr.mxu0 %v2106_v3 }
  0x94   :  { %v951_v45 = vpop.permute.xlu1 %950  ;;  %680 = vmatprep.mubr.f32.mxu0 %v2050_v2  ;;  %v949_v47 = vpop.permute.xlu0 %948  ;;  %778 = vmatpush1.msra.mxu0 %v2095_v0 }
  0x95   :  { %v956_v48 = vsel %vm954_vm5, %v949_v47, %v951_v45 }
  0x96   :  { %967 = vmatprep.subr.mxu0 %v956_v48 }
  0x97   :  { %1858 = vmatmul.mubr.msk.f32.gmra.mrb[2].mxu0 %vm57_vm1, %v1856_v46 }
  0x98   :  { %1936 = vmatmul.mubr.msk.f32.vlgmr.msra.gmra.mrb[4].mxu1 %vm57_vm1, %v1850_v37  ;;  %v1131_v49 = vpop.permute.xlu1 %1130  ;;  %841 = vmatprep.mubr.f32.mxu0 %v2050_v2  ;;  %v947_v51 = vpop.permute.xlu0 %946 }
  0x99   :  { %1939 = vmatpush3.msra.mxu1 %v600_v44  ;;  %v955_v52 = vsel %vm954_vm5, %v947_v51, %v949_v47  ;;  %1940 = vmatprep.mubr.msk.f32.mxu1 %vm57_vm1, %v1855_v42 }
  0x9a   :  { %1943 = vmatprep.subr.mxu1 %v2111_v4 }
  0x9b   :  { %1863 = vmatmul.mubr.msk.f32.vlgmr.msra.gmra.mrb[0].mxu0 %vm57_vm1, %v1861_v50 }
  0x9c   :  { %v953_v53 = vpop.permute.xlu1 %952  ;;  %847 = vmatprep.mubr.f32.mxu0 %v2050_v2  ;;  %968 = vmatpush1.msra.mxu0 %v955_v52  ;;  %v1133_v55 = vpop.permute.xlu0 %1132  ;;  %v2060_v52 = vmov 0.0|0.0  }
  0x9d   :  { %v1138_v56 = vsel %vm1136_vm6, %v1131_v49, %v1133_v55  ;;  %v957_v57 = vsel %vm954_vm5, %v951_v45, %v953_v53 }
  0x9e   :  { %1149 = vmatprep.subr.mxu0 %v1138_v56 }
  0x9f   :  { %1864 = vmatmul.mubr.msk.f32.gmra.mrb[2].mxu0 %vm57_vm1, %v1862_v54 }
  0xa0   :  { %1941 = vmatmul.mubr.msk.f32.vlgmr.msra.gmra.mrb[4].mxu1 %vm57_vm1, %v1856_v46  ;;  %v1313_v58 = vpop.permute.xlu1 %1312  ;;  %1031 = vmatprep.mubr.f32.mxu0 %v2050_v2  ;;  %v1129_v60 = vpop.permute.xlu0 %1128 }
  0xa1   :  { %1944 = vmatpush3.msra.mxu1 %v2111_v4  ;;  %v1137_v61 = vsel %vm1136_vm6, %v1129_v60, %v1131_v49  ;;  %1945 = vmatprep.mubr.msk.f32.mxu1 %vm57_vm1, %v1861_v50  ;;  %v1677_v49 = vld [vmem:[%s2300_s3] sm:$0xff] }
  0xa2   :  { %1948 = vmatprep.subr.mxu1 %v957_v57 }
  0xa3   :  { %1869 = vmatmul.mubr.msk.f32.vlgmr.msra.gmra.mrb[0].mxu0 %vm57_vm1, %v1867_v59 }
  0xa4   :  { %v1135_v62 = vpop.permute.xlu1 %1134  ;;  %1037 = vmatprep.mubr.f32.mxu0 %v2050_v2  ;;  %1150 = vmatpush1.msra.mxu0 %v1137_v61  ;;  %v1315_v1 = vpop.permute.xlu0 %1314 }
  0xa5   :  { %v1320_v5 = vsel %vm1318_vm7, %v1313_v58, %v1315_v1  ;;  %v1139_v6 = vsel %vm1136_vm6, %v1133_v55, %v1135_v62 }
  0xa6   :  { %1331 = vmatprep.subr.mxu0 %v1320_v5 }
  0xa7   :  { %1870 = vmatmul.mubr.msk.f32.gmra.mrb[2].mxu0 %vm57_vm1, %v1868_v63 }
  0xa8   :  { %1946 = vmatmul.mubr.msk.f32.vlgmr.msra.gmra.mrb[4].mxu1 %vm57_vm1, %v1862_v54  ;;  %v1495_v7 = vpop.permute.xlu1 %1494  ;;  %1213 = vmatprep.mubr.f32.mxu0 %v2050_v2  ;;  %v1311_v9 = vpop.permute.xlu0 %1310 }
  0xa9   :  { %1949 = vmatpush3.msra.mxu1 %v957_v57  ;;  %v1319_v10 = vsel %vm1318_vm7, %v1311_v9, %v1313_v58  ;;  %1950 = vmatprep.mubr.msk.f32.mxu1 %vm57_vm1, %v1867_v59 }
  0xaa   :  { %1953 = vmatprep.subr.mxu1 %v1139_v6 }
  0xab   :  { %1875 = vmatmul.mubr.msk.f32.vlgmr.msra.gmra.mrb[0].mxu0 %vm57_vm1, %v1873_v8 }
  0xac   :  { %v1317_v11 = vpop.permute.xlu1 %1316  ;;  %1219 = vmatprep.mubr.f32.mxu0 %v2050_v2  ;;  %1332 = vmatpush1.msra.mxu0 %v1319_v10  ;;  %v1497_v13 = vpop.permute.xlu0 %1496 }
  0xad   :  { %v1502_v14 = vsel %vm1500_vm8, %v1495_v7, %v1497_v13  ;;  %v1321_v15 = vsel %vm1318_vm7, %v1315_v1, %v1317_v11 }
  0xae   :  { %1513 = vmatprep.subr.mxu0 %v1502_v14 }
  0xaf   :  { %1876 = vmatmul.mubr.msk.f32.gmra.mrb[2].mxu0 %vm57_vm1, %v1874_v12 }
  0xb0   :  { %1951 = vmatmul.mubr.msk.f32.vlgmr.msra.gmra.mrb[4].mxu1 %vm57_vm1, %v1868_v63  ;;  %1395 = vmatprep.mubr.f32.mxu0 %v2050_v2  ;;  %v1493_v17 = vpop.permute.xlu0 %1492  ;;  %v1499_v19 = vpop.permute.xlu1 %1498 }
  0xb1   :  { %1954 = vmatpush3.msra.mxu1 %v1139_v6  ;;  %v1501_v18 = vsel %vm1500_vm8, %v1493_v17, %v1495_v7  ;;  %1955 = vmatprep.mubr.msk.f32.mxu1 %vm57_vm1, %v1873_v8  ;;  %v1503_v21 = vsel %vm1500_vm8, %v1497_v13, %v1499_v19 }
  0xb2   :  { %1958 = vmatprep.subr.mxu1 %v1321_v15 }
  0xb3   :  { %1881 = vmatmul.mubr.msk.f32.vlgmr.msra.gmra.mrb[0].mxu0 %vm57_vm1, %v1879_v16 }
  0xb4   :  { %1401 = vmatprep.mubr.f32.mxu0 %v2050_v2  ;;  %1514 = vmatpush1.msra.mxu0 %v1501_v18 }
  0xb7   :  { %1882 = vmatmul.mubr.msk.f32.gmra.mrb[2].mxu0 %vm57_vm1, %v1880_v20 }
  0xb8   :  { %1956 = vmatmul.mubr.msk.f32.vlgmr.msra.gmra.mrb[4].mxu1 %vm57_vm1, %v1874_v12  ;;  %1577 = vmatprep.mubr.f32.mxu0 %v2050_v2 }
  0xb9   :  { %1959 = vmatpush3.msra.mxu1 %v1321_v15  ;;  %1960 = vmatprep.mubr.msk.f32.mxu1 %vm57_vm1, %v1879_v16 }
  0xba   :  { %1963 = vmatprep.subr.mxu1 %v1503_v21 }
  0xbb   :  { %1887 = vmatmul.mubr.msk.f32.vlgmr.msra.gmra.mrb[0].mxu0 %vm57_vm1, %v1885_v22 }
  0xbc   :  { %1583 = vmatprep.mubr.f32.mxu0 %v2050_v2 }
  0xbf   :  { %1888 = vmatmul.mubr.msk.f32.gmra.mrb[2].mxu0 %vm57_vm1, %v1886_v23 }
  0xc0   :  { %1961 = vmatmul.mubr.msk.f32.vlgmr.msra.gmra.mrb[4].mxu1 %vm57_vm1, %v1880_v20 }
  0xc1   :  { %1964 = vmatpush3.msra.mxu1 %v1503_v21  ;;  %1965 = vmatprep.mubr.msk.f32.mxu1 %vm57_vm1, %v1885_v22  ;;  %v25_v28 = vpop.permute.xlu0 %24  ;;  %v30_v31 = vpop.permute.xlu1 %29 }
  0xc5   :  { %v1682_v57 = vpop.permute.xlu1 %1681 }
  0xc8   :  { %1966 = vmatmul.mubr.msk.f32.vlgmr.msra.gmra.mrb[4].mxu1 %vm57_vm1, %v1886_v23 }
  0xc9   :  { %1752 = vmatprep.mubr.f32.mxu1 %v2050_v2 }
 0x15b   :  { %v312_v24 = vpop.f32.mrb[0].mxu1 }
 0x15c   :  { %v314_v25 = vpop.f32.mrb[1].mxu1  ;;  %v1982_v29 = vadd.f32 %v312_v24, %v25_v28 }
 0x15d   :  { %v1984_v30 = vadd.f32 %v314_v25, %v25_v28 }
 0x15f   :  { %v318_v26 = vpop.f32.mrb[2].mxu1 }
 0x160   :  { %v320_v27 = vpop.f32.mrb[3].mxu1  ;;  %v1986_v36 = vadd.f32 %v318_v26, %v30_v31 }
 0x161   :  { %v1988_v37 = vadd.f32 %v320_v27, %v30_v31 }
 0x18e   :  { %v1579_v32 = vpop.f32.mrb[0].mxu0 }
 0x18f   :  { %v1983_v33 = vadd.f32 %v1982_v29, %v1579_v32  ;;  %v1581_v34 = vpop.f32.mrb[1].mxu0 }
 0x190   :  { %v1985_v35 = vadd.f32 %v1984_v30, %v1581_v34 }
 0x191   :  { %v1671_v42 = vmax.f32 %v1983_v33, 0.0 }
 0x192   :  { %v1585_v38 = vpop.f32.mrb[2].mxu0  ;;  %v1672_v44 = vmax.f32 %v1985_v35, 0.0 }
 0x193   :  { %v1987_v39 = vadd.f32 %v1986_v36, %v1585_v38  ;;  %v1587_v40 = vpop.f32.mrb[3].mxu0 }
 0x194   :  { %v1989_v41 = vadd.f32 %v1988_v37, %v1587_v40 }
 0x195   :  { %v1674_v43 = vmax.f32 %v1987_v39, 0.0 }
 0x196   :  { %v1675_v45 = vmax.f32 %v1989_v41, 0.0 }
 0x197   :  { %v1977_v46 = vpack.c.bf16 %v1674_v43, %v1671_v42 }
 0x198   :  { %v1975_v47 = vpack.c.bf16 %v1675_v45, %v1672_v44 }
 0x19a   :  { %1976 = vmatprep.subr.bf16.mxu1 %v1975_v47 }
 0x19b   :  { %v1967_v48 = vpop.f32.mrb[4].mxu1  ;;  %1978 = vmatpush1.bf16.msra.mxu1 %v1977_v46 }
 0x19c   :  { %v1990_v50 = vadd.f32 %v1967_v48, %v30_v31  ;;  %v1656_v51 = vpop.f32.mrb[5].mxu1  ;;  %1979 = vmatprep.subr.bf16.mxu1 %v2060_v52 }
 0x19d   :  { %v1991_v53 = vadd.f32 %v1656_v51, %v25_v28 }
 0x19e   :  { %v1676_v54 = vmax.f32 %v1990_v50, 0.0  ;;  %1891 = vmatmul.mubr.msk.f32.vlgmr.msra.gmra.mrb[6].mxu1 %vm1684_vm9, %v1677_v49 }
 0x19f   :  { %v1673_v55 = vmax.f32 %v1991_v53, 0.0  ;;  %1972 = vmatprep.mubr.msk.f32.mxu1 %vm2061_vm10, %v2050_v2 }
 0x1a1   :  { %v1980_v56 = vpack.c.bf16 %v1676_v54, %v1673_v55 }
 0x1a3   :  { %1981 = vmatpush3.bf16.msra.mxu1 %v1980_v56 }
 0x1a6   :  { %1973 = vmatmul.mubr.msk.f32.vlgmr.msra.gmra.mrb[8].mxu1 %vm1684_vm9, %v1677_v49 }
 0x271   :  { %v1754_v58 = vpop.f32.mrb[6].mxu1 }
 0x272   :  { %v1755_v59 = vadd.f32 %v1754_v58, %v1682_v57  ;;  %v1756_v60 = vpop.f32.mrb[7].mxu1 }
 0x273   :  { %v1757_v61 = vadd.f32 %v1756_v60, %v1682_v57 }
 0x274   :  { %v1829_v62 = vadd.f32 %v1755_v59, %v2095_v0 }
 0x275   :  { %v1830_v63 = vadd.f32 %v1757_v61, %v2106_v3 }
 0x276   :  { %1832 = vst [vmem:[%s2301_s5] sm:$0xff] %v1829_v62 }
 0x277   :  { %1833 = vst [vmem:[%s2301_s5 + $0x8] sm:$0xff] %v1830_v63 }
 0x279   :  { %v1825_v2 = vpop.f32.mrb[8].mxu1 }
 0x27a   :  { %v1826_v1 = vadd.f32 %v1825_v2, %v1682_v57  ;;  %v1974_v5 = vpop.f32.mrb[9].mxu1 }
 0x27c   :  { %v1831_v6 = vadd.f32 %v1826_v1, %v2111_v4 }
 0x27e   :  { %1834 = vst [vmem:[%s2301_s5 + $0x10] sm:$0xff] %v1831_v6 }

</bundles_post_ra>
